<compile_context>
chip_gen: v7x
topology: tpu7x:2x2x1
jax: 0.10.0
libtpu: 0.0.40
codegen_flags: <defaults>
</compile_context>

<pallas_src>
import functools

import numpy as np
import jax
import jax.numpy as jnp
from jax.experimental import pallas as pl
from jax.experimental.pallas import tpu as pltpu


# ---------------------------------------------------------------------------
# Generation-aware knobs
# ---------------------------------------------------------------------------

@functools.lru_cache(maxsize=None)
def _device_kind():
    try:
        return jax.devices()[0].device_kind.lower()
    except Exception:
        return ""


def _is_v5e():
    k = _device_kind()
    return ("v5 lite" in k) or ("v5e" in k) or ("v5lite" in k)


def _vmem_limit_bytes():
    """Scoped-VMEM request per generation: <=48 MiB on v7x (64 MiB physical),
    64 MiB on v5e/v6e (128 MiB physical), backend default elsewhere."""
    k = _device_kind()
    if "v7" in k or "7x" in k:
        return 48 * 1024 * 1024
    if "v5" in k or "v6" in k:
        return 64 * 1024 * 1024
    return None


def _compiler_params():
    kwargs = dict(dimension_semantics=("parallel",))
    vml = _vmem_limit_bytes()
    if vml is not None:
        kwargs["vmem_limit_bytes"] = vml
    return pltpu.CompilerParams(**kwargs)


def _operand_spec(block_shape, index_map, single_buffer):
    """Spec for a grid-resident (constant block index) operand.  With
    single_buffer=True we request pl.Buffered(1) so no VMEM is wasted on a
    second pipeline buffer; callers fall back to the default spec otherwise."""
    if single_buffer:
        return pl.BlockSpec(block_shape, index_map, pipeline_mode=pl.Buffered(1))
    return pl.BlockSpec(block_shape, index_map)


def _round_up(v, m):
    return -(-v // m) * m


# ---------------------------------------------------------------------------
# Host-side operator construction (lru_cache: built & uploaded once per (H, W)).
# ---------------------------------------------------------------------------

@functools.lru_cache(maxsize=None)
def _fused_operator(H, W):
    """(H*W, 2*H*W) f32 operator: columns [0:HW] real / [HW:2HW] imag of the
    fftshift-ed 2-D DFT, applied as  flat_spectrum = flat_image @ op."""
    h = np.arange(H)
    hs = (h - H // 2) % H                               # fftshift of output rows
    w = np.arange(W)
    ws = (w - W // 2) % W                               # fftshift of output cols
    eh = np.exp(-2j * np.pi * np.outer(h, hs) / H)      # [in_h, out_u]
    ew = np.exp(-2j * np.pi * np.outer(w, ws) / W)      # [in_w, out_v]
    bc = np.kron(eh, ew)                                # [(a,b), (u,v)]
    op = np.concatenate([bc.real, bc.imag], axis=1).astype(np.float32)
    return jnp.asarray(op)


@functools.lru_cache(maxsize=None)
def _stacked_dft_factors(H, W):
    """FH2 = [C_H; S_H] (2H, H) and FW2 = [C_W^T | 0 | S_W^T] (W, WA + W) with
    the imag block starting at WA = round_up(W, 128) (lane-aligned).  fftshift
    is baked into the output-frequency ordering."""
    h = np.arange(H)
    hs = (h - H // 2) % H
    th_h = 2.0 * np.pi * np.outer(hs, h) / H            # [out_u, in_h]
    fh2 = np.concatenate([np.cos(th_h), -np.sin(th_h)], axis=0).astype(np.float32)

    w = np.arange(W)
    ws = (w - W // 2) % W
    th_w = 2.0 * np.pi * np.outer(w, ws) / W            # [in_w, out_v]
    wa = max(128, _round_up(W, 128))                    # lane-aligned imag offset
    fw2 = np.zeros((W, wa + W), dtype=np.float32)
    fw2[:, :W] = np.cos(th_w)
    fw2[:, wa:] = -np.sin(th_w)
    return jnp.asarray(fh2), jnp.asarray(fw2)


# ---------------------------------------------------------------------------
# Kernels
# ---------------------------------------------------------------------------

def _fused_spectral_kernel(x_ref, op_ref, o_ref):
    # x_ref : (tm, HW)     rows = (sample, channel), row-major flattened images
    # op_ref: (HW, 2*HW)   [real | imag] spectral operator, grid-resident
    # o_ref : (tm, 2*HW)   single fully lane-dense store
    o_ref[...] = jnp.dot(x_ref[...], op_ref[...],
                         preferred_element_type=jnp.float32)


def _factorized_spectral_kernel(x_ref, fh2_ref, fw2_ref, o_ref, p_ref):
    # x_ref  : (tb, C, H, W)
    # fh2_ref: (2H, H)       [C_H; S_H], grid-resident
    # fw2_ref: (W, WA + W)   [C_W^T | 0 | S_W^T], imag block lane-aligned at WA
    # o_ref  : (tb, 2C, H, W)
    # p_ref  : VMEM scratch (tb*C*2H, W) staging the per-channel row DFTs
    tb, c, h, w = x_ref.shape
    wa = fw2_ref.shape[1] - w
    fh2 = fh2_ref[...]
    # 1) row DFT, per channel (shared resident weights, M = 2H per dot).
    for s in range(tb):
        for ci in range(c):
            r0 = (s * c + ci) * 2 * h
            p_ref[r0:r0 + 2 * h, :] = jnp.dot(
                fh2, x_ref[s, ci], preferred_element_type=jnp.float32)
    # 2) column DFT: ONE fused MXU matmul across all tb*C channels
    #    (M = tb*C*2H rows -> amortizes the FW2 weight push).
    q = jnp.dot(p_ref[...], fw2_ref[...], preferred_element_type=jnp.float32)
    # 3) combine to real/imag.  Row offsets are multiples of 2H, lane offsets
    #    are 0 / WA (WA % 128 == 0): no cross-lane shuffles.
    for s in range(tb):
        for ci in range(c):
            r0 = (s * c + ci) * 2 * h
            cc = q[r0:r0 + h, 0:w]                    # C_H x C_W^T
            cs = q[r0:r0 + h, wa:wa + w]              # C_H x S_W^T
            sc = q[r0 + h:r0 + 2 * h, 0:w]            # S_H x C_W^T
            ss = q[r0 + h:r0 + 2 * h, wa:wa + w]      # S_H x S_W^T
            o_ref[s, ci] = cc - ss                    # real
            o_ref[s, c + ci] = cs + sc                # imag


# ---------------------------------------------------------------------------
# Tile selection
# ---------------------------------------------------------------------------

def _pick_row_tile(rows):
    """Rows (= N*C flattened images) per fused grid step: fill the MXU M dim
    (v5e: 384 = 3*128; v6e/v7x: 512), or take the whole row extent if smaller."""
    max_rows = 384 if _is_v5e() else 512
    return rows if rows <= max_rows else max_rows


def _pick_batch_tile(n, c, h, w, wa):
    """Samples per factorized grid step, sized so double-buffered in/out blocks
    plus the staged P / fused Q temporaries stay around ~20 MiB."""
    lanes = lambda d: _round_up(max(d, 1), 128)
    per_sample = (c * h * lanes(w) * 4 * 2            # input, double-buffered
                  + 2 * c * h * lanes(w) * 4 * 2      # output, double-buffered
                  + 2 * c * h * lanes(w) * 4          # P scratch
                  + 2 * c * h * lanes(wa + w) * 4)    # fused Q result
    budget = 20 * 1024 * 1024
    return max(1, min(n, 8, budget // per_sample))


# ---------------------------------------------------------------------------
# Wrappers
# ---------------------------------------------------------------------------

def _to_spectral_fused(x):
    n, c, hgt, wid = x.shape
    hw = hgt * wid
    op2 = _fused_operator(hgt, wid)                    # (HW, 2*HW), cached
    rows = n * c
    x2d = x.astype(jnp.float32).reshape(rows, hw)      # free XLA reshape
    tm = _pick_row_tile(rows)

    def run(single_buffer):
        return pl.pallas_call(
            _fused_spectral_kernel,
            out_shape=jax.ShapeDtypeStruct((rows, 2 * hw), jnp.float32),
            grid_spec=pltpu.PrefetchScalarGridSpec(
                num_scalar_prefetch=0,
                grid=(pl.cdiv(rows, tm),),             # single 'parallel' axis
                in_specs=[
                    pl.BlockSpec((tm, hw), lambda i: (i, 0)),
                    _operand_spec((hw, 2 * hw), lambda i: (0, 0), single_buffer),
                ],
                out_specs=pl.BlockSpec((tm, 2 * hw), lambda i: (i, 0)),
            ),
            compiler_params=_compiler_params(),
        )(x2d, op2)

    try:
        out = run(True)            # operator single-buffered (grid-resident)
    except Exception:
        out = run(False)           # fallback: default double-buffering

    # (N*C, 2*HW) -> (N, 2C, H, W): wrapper-side layout transpose so the kernel
    # stores stay fully lane-dense (real channels first, imag channels second
    # == torch.cat(dim=1)).
    out = out.reshape(n, c, 2, hgt, wid)
    out = jnp.transpose(out, (0, 2, 1, 3, 4))
    return out.reshape(n, 2 * c, hgt, wid)


def _to_spectral_factorized(x):
    n, c, hgt, wid = x.shape
    fh2, fw2 = _stacked_dft_factors(hgt, wid)          # cached
    wa = fw2.shape[1] - wid
    xf = x.astype(jnp.float32)
    tb = _pick_batch_tile(n, c, hgt, wid, wa)

    def run(single_buffer):
        return pl.pallas_call(
            _factorized_spectral_kernel,
            out_shape=jax.ShapeDtypeStruct((n, 2 * c, hgt, wid), jnp.float32),
            grid_spec=pltpu.PrefetchScalarGridSpec(
                num_scalar_prefetch=0,
                grid=(pl.cdiv(n, tb),),                # single 'parallel' axis
                in_specs=[
                    pl.BlockSpec((tb, c, hgt, wid), lambda i: (i, 0, 0, 0)),
                    _operand_spec((2 * hgt, hgt), lambda i: (0, 0), single_buffer),
                    _operand_spec((wid, wa + wid), lambda i: (0, 0), single_buffer),
                ],
                out_specs=pl.BlockSpec((tb, 2 * c, hgt, wid),
                                       lambda i: (i, 0, 0, 0)),
                scratch_shapes=[
                    pltpu.VMEM((tb * c * 2 * hgt, wid), jnp.float32)],
            ),
            compiler_params=_compiler_params(),
        )(xf, fh2, fw2)

    try:
        return run(True)
    except Exception:
        return run(False)


def to_spectral(x, fused=None):
    """x: (N, C, H, W) float32 -> (N, 2C, H, W) float32,
    == torch.cat([S.real, S.imag], 1) with S = fftshift(fft2(x))."""
    _, _, hgt, wid = x.shape
    if fused is None:
        # v5e's smaller MXU prefers the factorized path earlier (review item).
        limit = 512 if _is_v5e() else 1024
        fused = hgt * wid <= limit
    return _to_spectral_fused(x) if fused else _to_spectral_factorized(x)


if __name__ == "__main__":
    key = jax.random.PRNGKey(0)
    N, C, H, W = 2, 4, 16, 16
    x = jax.random.normal(key, (N, C, H, W), dtype=jnp.float32)

    # Reference (plain JAX, outside the kernel).
    spec = jnp.fft.fftshift(jnp.fft.fft2(x), axes=(-2, -1))
    ref = jnp.concatenate([spec.real, spec.imag], axis=1)

    out = jax.block_until_ready(to_spectral(x))                  # fused path
    assert out.shape == (N, 2 * C, H, W)
    assert out.dtype == jnp.float32
    np.testing.assert_allclose(np.asarray(out), np.asarray(ref),
                               atol=2e-3, rtol=2e-3)

    out_f = jax.block_until_ready(to_spectral(x, fused=False))   # large-H*W path
    assert out_f.shape == (N, 2 * C, H, W)
    np.testing.assert_allclose(np.asarray(out_f), np.asarray(ref),
                               atol=2e-3, rtol=2e-3)

    print("KERNEL_OK")
</pallas_src>

<mosaic_0001>
module attributes {stable_mosaic.version = 11 : i64} {
  func.func @_fused_spectral_kernel(%arg0: i32, %arg1: memref<8x256xf32, #tpu.memory_space<vmem>>, %arg2: memref<256x512xf32, #tpu.memory_space<vmem>>, %arg3: memref<8x512xf32, #tpu.memory_space<vmem>>) attributes {dimension_semantics = [#tpu.dimension_semantics<parallel>], iteration_bounds = array<i64: 1>, scalar_prefetch = 0 : i64, scratch_operands = 0 : i64, tpu.core_type = #tpu.core_type<tc>, window_params = [{transform_indices = @transform_0, window_bounds = array<i64: 8, 256>}, {pipeline_mode = #tpu.pipeline_mode<synchronous>, transform_indices = @transform_1, window_bounds = array<i64: 256, 512>}, {transform_indices = @transform_2, window_bounds = array<i64: 8, 512>}]} {
    %c0 = arith.constant 0 : index
    %c0_0 = arith.constant 0 : index
    %0 = vector.load %arg1[%c0, %c0_0] : memref<8x256xf32, #tpu.memory_space<vmem>>, vector<8x256xf32>
    %c0_1 = arith.constant 0 : index
    %c0_2 = arith.constant 0 : index
    %1 = vector.load %arg2[%c0_1, %c0_2] : memref<256x512xf32, #tpu.memory_space<vmem>>, vector<256x512xf32>
    %cst = arith.constant dense<0.000000e+00> : vector<8x512xf32>
    %2 = tpu.matmul %0, %1, %cst {dimension_numbers = #tpu.dot_dimension_numbers<[1], [0], [0], [1], [0, 0, 1, 1], [], []>} : vector<8x256xf32>, vector<256x512xf32>, vector<8x512xf32> -> vector<8x512xf32>
    %c0_3 = arith.constant 0 : index
    %c0_4 = arith.constant 0 : index
    %3 = vector.load %arg3[%c0_3, %c0_4] : memref<8x512xf32, #tpu.memory_space<vmem>>, vector<8x512xf32>
    tpu.vector_store %arg3[%c0_3, %c0_4], %2 {strides = array<i32>} : memref<8x512xf32, #tpu.memory_space<vmem>>, vector<8x512xf32>,
    return
  }
  func.func @transform_0(%arg0: i32) -> (i32, i32) {
    %c0_i32 = arith.constant 0 : i32
    %c0_i32_0 = arith.constant 0 : i32
    return %arg0, %c0_i32 : i32, i32
  }
  func.func @transform_1(%arg0: i32) -> (i32, i32) {
    %c0_i32 = arith.constant 0 : i32
    %c0_i32_0 = arith.constant 0 : i32
    %c0_i32_1 = arith.constant 0 : i32
    return %c0_i32, %c0_i32_0 : i32, i32
  }
  func.func @transform_2(%arg0: i32) -> (i32, i32) {
    %c0_i32 = arith.constant 0 : i32
    %c0_i32_0 = arith.constant 0 : i32
    return %arg0, %c0_i32 : i32, i32
  }
}

module attributes {stable_mosaic.version = 11 : i64} {
  func.func @_fused_spectral_kernel(%arg0: i32, %arg1: memref<8x256xf32, #tpu.memory_space<vmem>>, %arg2: memref<256x512xf32, #tpu.memory_space<vmem>>, %arg3: memref<8x512xf32, #tpu.memory_space<vmem>>) attributes {dimension_semantics = [#tpu.dimension_semantics<parallel>], iteration_bounds = array<i64: 1>, scalar_prefetch = 0 : i64, scratch_operands = 0 : i64, tpu.core_type = #tpu.core_type<tc>, window_params = [{transform_indices = @transform_0, window_bounds = array<i64: 8, 256>}, {pipeline_mode = #tpu.pipeline_mode<synchronous>, transform_indices = @transform_1, window_bounds = array<i64: 256, 512>}, {transform_indices = @transform_2, window_bounds = array<i64: 8, 512>}]} {
    %c0 = arith.constant 0 : index
    %c0_0 = arith.constant 0 : index
    %0 = vector.load %arg1[%c0, %c0_0] : memref<8x256xf32, #tpu.memory_space<vmem>>, vector<8x256xf32>
    %c0_1 = arith.constant 0 : index
    %c0_2 = arith.constant 0 : index
    %1 = vector.load %arg2[%c0_1, %c0_2] : memref<256x512xf32, #tpu.memory_space<vmem>>, vector<256x512xf32>
    %cst = arith.constant dense<0.000000e+00> : vector<8x512xf32>
    %2 = tpu.matmul %0, %1, %cst {dimension_numbers = #tpu.dot_dimension_numbers<[1], [0], [0], [1], [0, 0, 1, 1], [], []>} : vector<8x256xf32>, vector<256x512xf32>, vector<8x512xf32> -> vector<8x512xf32>
    %c0_3 = arith.constant 0 : index
    %c0_4 = arith.constant 0 : index
    %3 = vector.load %arg3[%c0_3, %c0_4] : memref<8x512xf32, #tpu.memory_space<vmem>>, vector<8x512xf32>
    tpu.vector_store %arg3[%c0_3, %c0_4], %2 {strides = array<i32>} : memref<8x512xf32, #tpu.memory_space<vmem>>, vector<8x512xf32>,
    return
  }
  func.func @transform_0(%arg0: i32) -> (i32, i32) {
    %c0_i32 = arith.constant 0 : i32
    %c0_i32_0 = arith.constant 0 : i32
    return %arg0, %c0_i32 : i32, i32
  }
  func.func @transform_1(%arg0: i32) -> (i32, i32) {
    %c0_i32 = arith.constant 0 : i32
    %c0_i32_0 = arith.constant 0 : i32
    %c0_i32_1 = arith.constant 0 : i32
    return %c0_i32, %c0_i32_0 : i32, i32
  }
  func.func @transform_2(%arg0: i32) -> (i32, i32) {
    %c0_i32 = arith.constant 0 : i32
    %c0_i32_0 = arith.constant 0 : i32
    return %arg0, %c0_i32 : i32, i32
  }
}

</mosaic_0001>

<bundles_post_ra>
// kernel: tpu_custom_call.1
= control target key start
LH: loop header
LB: loop body
LE: loop exit
PB: predicated region body
PF: predicated region fallthrough
CT: control target
= control target key end

     0   :  { %7 = vsyncpa [#allocation3], 0  ;;  %s598_s0 = inlined_call_operand.hbm [shape: f32[8,256], index: 0, kind: input, shape index: {}]   ;;  %s599_s1 = inlined_call_operand.hbm [shape: f32[256,512], index: 1, kind: input, shape index: {}]   ;;  %s600_s2 = inlined_call_operand.hbm [shape: f32[8,512], index: 2, kind: output, shape index: {}]  }
   0x1   :  { %8 = vsyncpa [#allocation6], 0 }
   0x2   :  { %9 = vsyncpa [#allocation4], 0  ;;  %s535_s9 = smov [#allocation2]   ;;  %s536_s11 = smov [#allocation5]  }
   0x3   :  { %s16_s10 = sshll.u32 %s535_s9, 4  ;;  %s25_s12 = sshll.u32 %s536_s11, 4  ;;  %s17_s10 = int_to_ptr.vmem [resolvable:$true] %s16_s10  ;;  %s555_s12 = int_to_ptr.vmem [resolvable:$true] %s25_s12 }
   0x4   :  { %s463_s15 = scalar_lea.hbm %s598_s0, 256 }
   0x5   :  { %p464_p0 = scmp.ne.s32.totalorder %s598_s0, %s463_s15  ;;  %p467_p1 = scmp.lt.u32.totalorder %s463_s15, %s598_s0 }
   0x7   :  { %p469_p2 = pnand %p467_p1, %p464_p0 }
   0x9   :  { %472 = shalt.err (!%p469_p2)
}
   0xa   :  { %s473_s20 = scalar_lea.vmem %s17_s10, 256  ;;  %p478_p4 = scmp.lt.s32.totalorder %s17_s10, %s17_s10 }
   0xb   :  { %p474_p3 = scmp.ne.s32.totalorder %s17_s10, %s473_s20  ;;  %p479_p5 = scmp.lt.s32.totalorder %s473_s20, %s473_s20 }
   0xd   :  { %p480_p6 = por %p479_p5, %p478_p4 }
   0xf   :  { %p481_p7 = pnand %p480_p6, %p474_p3 }
  0x11   :  { %484 = shalt.err (!%p481_p7)
}
  0x12   :  { %19 = dma.hbm_to_vmem [thread:$0]  %s598_s0, 256, %s17_s10, [#allocation3]  }
  0x13   :  { %s485_s25 = scalar_lea.hbm %s599_s1, 16384 }
  0x14   :  { %p486_p8 = scmp.ne.s32.totalorder %s599_s1, %s485_s25  ;;  %p489_p9 = scmp.lt.u32.totalorder %s485_s25, %s599_s1 }
  0x16   :  { %p491_p10 = pnand %p489_p9, %p486_p8 }
  0x18   :  { %494 = shalt.err (!%p491_p10)
}
  0x19   :  { %s495_s30 = scalar_lea.vmem %s555_s12, 16384  ;;  %p500_p12 = scmp.lt.s32.totalorder %s555_s12, %s555_s12 }
  0x1a   :  { %p496_p11 = scmp.ne.s32.totalorder %s555_s12, %s495_s30  ;;  %p501_p13 = scmp.lt.s32.totalorder %s495_s30, %s495_s30 }
  0x1c   :  { %p502_p0 = por %p501_p13, %p500_p12 }
  0x1e   :  { %p503_p1 = pnand %p502_p0, %p496_p11 }
  0x20   :  { %506 = shalt.err (!%p503_p1)
}
  0x21   :  { %s537_s0 = smov 512   ;;  %s538_s3 = smov 32  }
  0x22   :  { %31 = dma.hbm_to_vmem [thread:$0]  %s599_s1, 16384, %s555_s12, [#allocation6], %s537_s0, %s537_s0, %s538_s3  }
  0x23   :  { %529 = dma.done.wait [#allocation3], 256  }
  0x24   :  { %530 = vsyncadd [#allocation3], 4294967040 }
  0x25   :  { %531 = dma.done.wait [#allocation6], 16384  }
  0x26   :  { %532 = vsyncadd [#allocation6], 4294950912  ;;  %v41_v0 = vld [vmem:[#allocation5 + $0x8] sm:$0xff]  ;;  %v43_v2 = vld [vmem:[#allocation5 + $0x18] sm:$0xff]  ;;  %s539_s1 = smov [#allocation7]  }
  0x27   :  { %v45_v1 = vld [vmem:[#allocation5 + $0x28] sm:$0xff]  ;;  %v47_v4 = vld [vmem:[#allocation5 + $0x38] sm:$0xff]  ;;  %v40_v5 = vld [vmem:[#allocation5] sm:$0xff]  ;;  %s320_s6 = sshll.u32 %s539_s1, 4  ;;  %s321_s6 = int_to_ptr.vmem [resolvable:$true] %s320_s6 }
  0x28   :  { %v330_v3 = vpack.c.bf16 %v45_v1, %v41_v0  ;;  %v44_v6 = vld [vmem:[#allocation5 + $0x20] sm:$0xff]  ;;  %v394_v7 = vpack.c.bf16 %v47_v4, %v43_v2  ;;  %v42_v9 = vld [vmem:[#allocation5 + $0x10] sm:$0xff]  ;;  %v49_v11 = vld [vmem:[#allocation5 + $0x48] sm:$0xff]  ;;  %s507_s7 = scalar_lea.vmem %s321_s6, 512  ;;  %p512_p3 = scmp.lt.s32.totalorder %s321_s6, %s321_s6 }
  0x29   :  { %v332_v8 = vpack.c.bf16 %v44_v6, %v40_v5  ;;  %v46_v10 = vld [vmem:[#allocation5 + $0x30] sm:$0xff]  ;;  %v53_v13 = vld [vmem:[#allocation5 + $0x68] sm:$0xff]  ;;  %v51_v14 = vld [vmem:[#allocation5 + $0x58] sm:$0xff]  ;;  %p508_p2 = scmp.ne.s32.totalorder %s321_s6, %s507_s7  ;;  %p513_p4 = scmp.lt.s32.totalorder %s507_s7, %s507_s7 }
  0x2a   :  { %331 = vmatprep.subr.bf16.mxu0 %v330_v3  ;;  %v396_v12 = vpack.c.bf16 %v46_v10, %v42_v9  ;;  %v55_v15 = vld [vmem:[#allocation5 + $0x78] sm:$0xff]  ;;  %395 = vmatprep.subr.bf16.mxu1 %v394_v7  ;;  %v334_v16 = vpack.c.bf16 %v53_v13, %v49_v11  ;;  %v48_v18 = vld [vmem:[#allocation5 + $0x40] sm:$0xff]  ;;  %v50_v20 = vld [vmem:[#allocation5 + $0x50] sm:$0xff] }
  0x2b   :  { %333 = vmatpush1.bf16.msra.mxu0 %v332_v8  ;;  %v398_v17 = vpack.c.bf16 %v55_v15, %v51_v14  ;;  %v52_v19 = vld [vmem:[#allocation5 + $0x60] sm:$0xff]  ;;  %v54_v22 = vld [vmem:[#allocation5 + $0x70] sm:$0xff]  ;;  %v57_v23 = vld [vmem:[#allocation5 + $0x88] sm:$0xff]  ;;  %p514_p5 = por %p513_p4, %p512_p3 }
  0x2c   :  { %397 = vmatpush1.bf16.msra.mxu1 %v396_v12  ;;  %v336_v21 = vpack.c.bf16 %v52_v19, %v48_v18  ;;  %v61_v24 = vld [vmem:[#allocation5 + $0xa8] sm:$0xff]  ;;  %335 = vmatprep.subr.bf16.mxu0 %v334_v16  ;;  %v400_v25 = vpack.c.bf16 %v54_v22, %v50_v20  ;;  %v59_v27 = vld [vmem:[#allocation5 + $0x98] sm:$0xff]  ;;  %v56_v29 = vld [vmem:[#allocation5 + $0x80] sm:$0xff] }
  0x2d   :  { %399 = vmatprep.subr.bf16.mxu1 %v398_v17  ;;  %v338_v26 = vpack.c.bf16 %v61_v24, %v57_v23  ;;  %v63_v28 = vld [vmem:[#allocation5 + $0xb8] sm:$0xff]  ;;  %v60_v31 = vld [vmem:[#allocation5 + $0xa0] sm:$0xff]  ;;  %v58_v32 = vld [vmem:[#allocation5 + $0x90] sm:$0xff]  ;;  %p515_p6 = pnand %p514_p5, %p508_p2 }
  0x2e   :  { %v402_v30 = vpack.c.bf16 %v63_v28, %v59_v27  ;;  %v62_v33 = vld [vmem:[#allocation5 + $0xb0] sm:$0xff]  ;;  %v340_v34 = vpack.c.bf16 %v60_v31, %v56_v29  ;;  %v65_v35 = vld [vmem:[#allocation5 + $0xc8] sm:$0xff]  ;;  %v67_v37 = vld [vmem:[#allocation5 + $0xd8] sm:$0xff] }
  0x2f   :  { %337 = vmatpush1.bf16.msra.mxu0 %v336_v21  ;;  %v69_v36 = vld [vmem:[#allocation5 + $0xe8] sm:$0xff]  ;;  %v404_v38 = vpack.c.bf16 %v62_v33, %v58_v32  ;;  %v71_v40 = vld [vmem:[#allocation5 + $0xf8] sm:$0xff]  ;;  %v64_v41 = vld [vmem:[#allocation5 + $0xc0] sm:$0xff] }
  0x30   :  { %401 = vmatpush1.bf16.msra.mxu1 %v400_v25  ;;  %339 = vmatprep.subr.bf16.mxu0 %v338_v26  ;;  %v342_v39 = vpack.c.bf16 %v69_v36, %v65_v35  ;;  %v68_v42 = vld [vmem:[#allocation5 + $0xe0] sm:$0xff]  ;;  %v406_v43 = vpack.c.bf16 %v71_v40, %v67_v37  ;;  %v66_v44 = vld [vmem:[#allocation5 + $0xd0] sm:$0xff]  ;;  %v73_v46 = vld [vmem:[#allocation5 + $0x108] sm:$0xff] }
  0x31   :  { %403 = vmatprep.subr.bf16.mxu1 %v402_v30  ;;  %v70_v45 = vld [vmem:[#allocation5 + $0xf0] sm:$0xff]  ;;  %v77_v47 = vld [vmem:[#allocation5 + $0x128] sm:$0xff]  ;;  %v75_v48 = vld [vmem:[#allocation5 + $0x118] sm:$0xff]  ;;  %v344_v50 = vpack.c.bf16 %v68_v42, %v64_v41 }
  0x32   :  { %v79_v49 = vld [vmem:[#allocation5 + $0x138] sm:$0xff]  ;;  %v408_v51 = vpack.c.bf16 %v70_v45, %v66_v44  ;;  %v346_v52 = vpack.c.bf16 %v77_v47, %v73_v46  ;;  %v72_v53 = vld [vmem:[#allocation5 + $0x100] sm:$0xff]  ;;  %v74_v55 = vld [vmem:[#allocation5 + $0x110] sm:$0xff] }
  0x33   :  { %341 = vmatpush1.bf16.msra.mxu0 %v340_v34  ;;  %v76_v54 = vld [vmem:[#allocation5 + $0x120] sm:$0xff]  ;;  %v410_v56 = vpack.c.bf16 %v79_v49, %v75_v48  ;;  %v78_v57 = vld [vmem:[#allocation5 + $0x130] sm:$0xff]  ;;  %v81_v58 = vld [vmem:[#allocation5 + $0x148] sm:$0xff] }
  0x34   :  { %405 = vmatpush1.bf16.msra.mxu1 %v404_v38  ;;  %343 = vmatprep.subr.bf16.mxu0 %v342_v39  ;;  %v85_v59 = vld [vmem:[#allocation5 + $0x168] sm:$0xff]  ;;  %v83_v60 = vld [vmem:[#allocation5 + $0x158] sm:$0xff]  ;;  %v348_v62 = vpack.c.bf16 %v76_v54, %v72_v53  ;;  %v412_v63 = vpack.c.bf16 %v78_v57, %v74_v55  ;;  %v80_v1 = vld [vmem:[#allocation5 + $0x140] sm:$0xff] }
  0x35   :  { %407 = vmatprep.subr.bf16.mxu1 %v406_v43  ;;  %v87_v61 = vld [vmem:[#allocation5 + $0x178] sm:$0xff]  ;;  %v350_v0 = vpack.c.bf16 %v85_v59, %v81_v58  ;;  %v84_v2 = vld [vmem:[#allocation5 + $0x160] sm:$0xff]  ;;  %v82_v3 = vld [vmem:[#allocation5 + $0x150] sm:$0xff] }
  0x36   :  { %v414_v4 = vpack.c.bf16 %v87_v61, %v83_v60  ;;  %v86_v5 = vld [vmem:[#allocation5 + $0x170] sm:$0xff]  ;;  %v89_v6 = vld [vmem:[#allocation5 + $0x188] sm:$0xff]  ;;  %v91_v8 = vld [vmem:[#allocation5 + $0x198] sm:$0xff]  ;;  %v352_v10 = vpack.c.bf16 %v84_v2, %v80_v1 }
  0x37   :  { %345 = vmatpush1.bf16.msra.mxu0 %v344_v50  ;;  %v93_v7 = vld [vmem:[#allocation5 + $0x1a8] sm:$0xff]  ;;  %v95_v9 = vld [vmem:[#allocation5 + $0x1b8] sm:$0xff]  ;;  %v416_v11 = vpack.c.bf16 %v86_v5, %v82_v3  ;;  %v88_v13 = vld [vmem:[#allocation5 + $0x180] sm:$0xff] }
  0x38   :  { %409 = vmatpush1.bf16.msra.mxu1 %v408_v51  ;;  %347 = vmatprep.subr.bf16.mxu0 %v346_v52  ;;  %v354_v12 = vpack.c.bf16 %v93_v7, %v89_v6  ;;  %v92_v14 = vld [vmem:[#allocation5 + $0x1a0] sm:$0xff]  ;;  %v90_v15 = vld [vmem:[#allocation5 + $0x190] sm:$0xff]  ;;  %v418_v16 = vpack.c.bf16 %v95_v9, %v91_v8  ;;  %v97_v18 = vld [vmem:[#allocation5 + $0x1c8] sm:$0xff] }
  0x39   :  { %411 = vmatprep.subr.bf16.mxu1 %v410_v56  ;;  %v94_v17 = vld [vmem:[#allocation5 + $0x1b0] sm:$0xff]  ;;  %v101_v19 = vld [vmem:[#allocation5 + $0x1e8] sm:$0xff]  ;;  %v99_v20 = vld [vmem:[#allocation5 + $0x1d8] sm:$0xff]  ;;  %v356_v22 = vpack.c.bf16 %v92_v14, %v88_v13 }
  0x3a   :  { %v103_v21 = vld [vmem:[#allocation5 + $0x1f8] sm:$0xff]  ;;  %v420_v23 = vpack.c.bf16 %v94_v17, %v90_v15  ;;  %v358_v24 = vpack.c.bf16 %v101_v19, %v97_v18  ;;  %v96_v25 = vld [vmem:[#allocation5 + $0x1c0] sm:$0xff]  ;;  %v98_v27 = vld [vmem:[#allocation5 + $0x1d0] sm:$0xff] }
  0x3b   :  { %349 = vmatpush1.bf16.msra.mxu0 %v348_v62  ;;  %v100_v26 = vld [vmem:[#allocation5 + $0x1e0] sm:$0xff]  ;;  %v422_v28 = vpack.c.bf16 %v103_v21, %v99_v20  ;;  %v102_v29 = vld [vmem:[#allocation5 + $0x1f0] sm:$0xff]  ;;  %v105_v30 = vld [vmem:[#allocation5 + $0x208] sm:$0xff] }
  0x3c   :  { %413 = vmatpush1.bf16.msra.mxu1 %v412_v63  ;;  %351 = vmatprep.subr.bf16.mxu0 %v350_v0  ;;  %v109_v31 = vld [vmem:[#allocation5 + $0x228] sm:$0xff]  ;;  %v107_v32 = vld [vmem:[#allocation5 + $0x218] sm:$0xff]  ;;  %v360_v34 = vpack.c.bf16 %v100_v26, %v96_v25  ;;  %v424_v35 = vpack.c.bf16 %v102_v29, %v98_v27  ;;  %v104_v37 = vld [vmem:[#allocation5 + $0x200] sm:$0xff] }
  0x3d   :  { %415 = vmatprep.subr.bf16.mxu1 %v414_v4  ;;  %v111_v33 = vld [vmem:[#allocation5 + $0x238] sm:$0xff]  ;;  %v362_v36 = vpack.c.bf16 %v109_v31, %v105_v30  ;;  %v108_v38 = vld [vmem:[#allocation5 + $0x220] sm:$0xff]  ;;  %v106_v39 = vld [vmem:[#allocation5 + $0x210] sm:$0xff] }
  0x3e   :  { %v426_v40 = vpack.c.bf16 %v111_v33, %v107_v32  ;;  %v110_v41 = vld [vmem:[#allocation5 + $0x230] sm:$0xff]  ;;  %v113_v42 = vld [vmem:[#allocation5 + $0x248] sm:$0xff]  ;;  %v115_v44 = vld [vmem:[#allocation5 + $0x258] sm:$0xff]  ;;  %v364_v46 = vpack.c.bf16 %v108_v38, %v104_v37 }
  0x3f   :  { %353 = vmatpush1.bf16.msra.mxu0 %v352_v10  ;;  %v117_v43 = vld [vmem:[#allocation5 + $0x268] sm:$0xff]  ;;  %v119_v45 = vld [vmem:[#allocation5 + $0x278] sm:$0xff]  ;;  %v428_v47 = vpack.c.bf16 %v110_v41, %v106_v39  ;;  %v112_v49 = vld [vmem:[#allocation5 + $0x240] sm:$0xff] }
  0x40   :  { %417 = vmatpush1.bf16.msra.mxu1 %v416_v11  ;;  %355 = vmatprep.subr.bf16.mxu0 %v354_v12  ;;  %v366_v48 = vpack.c.bf16 %v117_v43, %v113_v42  ;;  %v116_v50 = vld [vmem:[#allocation5 + $0x260] sm:$0xff]  ;;  %v114_v51 = vld [vmem:[#allocation5 + $0x250] sm:$0xff]  ;;  %v430_v52 = vpack.c.bf16 %v119_v45, %v115_v44  ;;  %v121_v54 = vld [vmem:[#allocation5 + $0x288] sm:$0xff] }
  0x41   :  { %419 = vmatprep.subr.bf16.mxu1 %v418_v16  ;;  %v118_v53 = vld [vmem:[#allocation5 + $0x270] sm:$0xff]  ;;  %v125_v55 = vld [vmem:[#allocation5 + $0x2a8] sm:$0xff]  ;;  %v123_v56 = vld [vmem:[#allocation5 + $0x298] sm:$0xff]  ;;  %v368_v58 = vpack.c.bf16 %v116_v50, %v112_v49 }
  0x42   :  { %v127_v57 = vld [vmem:[#allocation5 + $0x2b8] sm:$0xff]  ;;  %v432_v59 = vpack.c.bf16 %v118_v53, %v114_v51  ;;  %v370_v60 = vpack.c.bf16 %v125_v55, %v121_v54  ;;  %v120_v61 = vld [vmem:[#allocation5 + $0x280] sm:$0xff]  ;;  %v122_v63 = vld [vmem:[#allocation5 + $0x290] sm:$0xff] }
  0x43   :  { %357 = vmatpush1.bf16.msra.mxu0 %v356_v22  ;;  %v124_v62 = vld [vmem:[#allocation5 + $0x2a0] sm:$0xff]  ;;  %v434_v0 = vpack.c.bf16 %v127_v57, %v123_v56  ;;  %v126_v1 = vld [vmem:[#allocation5 + $0x2b0] sm:$0xff]  ;;  %v129_v2 = vld [vmem:[#allocation5 + $0x2c8] sm:$0xff] }
  0x44   :  { %421 = vmatpush1.bf16.msra.mxu1 %v420_v23  ;;  %359 = vmatprep.subr.bf16.mxu0 %v358_v24  ;;  %v133_v3 = vld [vmem:[#allocation5 + $0x2e8] sm:$0xff]  ;;  %v131_v4 = vld [vmem:[#allocation5 + $0x2d8] sm:$0xff]  ;;  %v372_v6 = vpack.c.bf16 %v124_v62, %v120_v61  ;;  %v128_v7 = vld [vmem:[#allocation5 + $0x2c0] sm:$0xff]  ;;  %v436_v8 = vpack.c.bf16 %v126_v1, %v122_v63 }
  0x45   :  { %423 = vmatprep.subr.bf16.mxu1 %v422_v28  ;;  %v135_v5 = vld [vmem:[#allocation5 + $0x2f8] sm:$0xff]  ;;  %v374_v9 = vpack.c.bf16 %v133_v3, %v129_v2  ;;  %v132_v10 = vld [vmem:[#allocation5 + $0x2e0] sm:$0xff]  ;;  %v130_v11 = vld [vmem:[#allocation5 + $0x2d0] sm:$0xff] }
  0x46   :  { %v134_v12 = vld [vmem:[#allocation5 + $0x2f0] sm:$0xff]  ;;  %v438_v13 = vpack.c.bf16 %v135_v5, %v131_v4  ;;  %v137_v14 = vld [vmem:[#allocation5 + $0x308] sm:$0xff]  ;;  %v39_v16 = vld [vmem:[#allocation2 + $0x8] sm:$0xff]  ;;  %v376_v19 = vpack.c.bf16 %v132_v10, %v128_v7 }
  0x47   :  { %361 = vmatpush1.bf16.msra.mxu0 %v360_v34  ;;  %v141_v15 = vld [vmem:[#allocation5 + $0x328] sm:$0xff]  ;;  %v139_v17 = vld [vmem:[#allocation5 + $0x318] sm:$0xff]  ;;  %232 = vmatprep.mubr.f32.mxu0 %v39_v16  ;;  %v440_v20 = vpack.c.bf16 %v134_v12, %v130_v11  ;;  %v136_v22 = vld [vmem:[#allocation5 + $0x300] sm:$0xff] }
  0x48   :  { %425 = vmatpush1.bf16.msra.mxu1 %v424_v35  ;;  %363 = vmatprep.subr.bf16.mxu0 %v362_v36  ;;  %v143_v18 = vld [vmem:[#allocation5 + $0x338] sm:$0xff]  ;;  %v378_v21 = vpack.c.bf16 %v141_v15, %v137_v14  ;;  %v140_v23 = vld [vmem:[#allocation5 + $0x320] sm:$0xff]  ;;  %v138_v24 = vld [vmem:[#allocation5 + $0x310] sm:$0xff] }
  0x49   :  { %427 = vmatprep.subr.bf16.mxu1 %v426_v40  ;;  %303 = vmatprep.mubr.f32.mxu1 %v39_v16  ;;  %v442_v25 = vpack.c.bf16 %v143_v18, %v139_v17  ;;  %v142_v26 = vld [vmem:[#allocation5 + $0x330] sm:$0xff]  ;;  %v145_v27 = vld [vmem:[#allocation5 + $0x348] sm:$0xff]  ;;  %v147_v29 = vld [vmem:[#allocation5 + $0x358] sm:$0xff]  ;;  %v380_v31 = vpack.c.bf16 %v140_v23, %v136_v22 }
  0x4a   :  { %v149_v28 = vld [vmem:[#allocation5 + $0x368] sm:$0xff]  ;;  %v151_v30 = vld [vmem:[#allocation5 + $0x378] sm:$0xff]  ;;  %v444_v32 = vpack.c.bf16 %v142_v26, %v138_v24  ;;  %v144_v34 = vld [vmem:[#allocation5 + $0x340] sm:$0xff] }
  0x4b   :  { %365 = vmatpush1.bf16.msra.mxu0 %v364_v46  ;;  %v382_v33 = vpack.c.bf16 %v149_v28, %v145_v27  ;;  %v148_v35 = vld [vmem:[#allocation5 + $0x360] sm:$0xff]  ;;  %v146_v36 = vld [vmem:[#allocation5 + $0x350] sm:$0xff]  ;;  %v446_v37 = vpack.c.bf16 %v151_v30, %v147_v29  ;;  %v153_v39 = vld [vmem:[#allocation5 + $0x388] sm:$0xff] }
  0x4c   :  { %429 = vmatpush1.bf16.msra.mxu1 %v428_v47  ;;  %367 = vmatprep.subr.bf16.mxu0 %v366_v48  ;;  %v150_v38 = vld [vmem:[#allocation5 + $0x370] sm:$0xff]  ;;  %v157_v40 = vld [vmem:[#allocation5 + $0x3a8] sm:$0xff]  ;;  %v155_v41 = vld [vmem:[#allocation5 + $0x398] sm:$0xff]  ;;  %v384_v43 = vpack.c.bf16 %v148_v35, %v144_v34 }
  0x4d   :  { %431 = vmatprep.subr.bf16.mxu1 %v430_v52  ;;  %v159_v42 = vld [vmem:[#allocation5 + $0x3b8] sm:$0xff]  ;;  %v448_v44 = vpack.c.bf16 %v150_v38, %v146_v36  ;;  %v386_v45 = vpack.c.bf16 %v157_v40, %v153_v39  ;;  %v152_v46 = vld [vmem:[#allocation5 + $0x380] sm:$0xff]  ;;  %v154_v48 = vld [vmem:[#allocation5 + $0x390] sm:$0xff] }
  0x4e   :  { %v156_v47 = vld [vmem:[#allocation5 + $0x3a0] sm:$0xff]  ;;  %v450_v49 = vpack.c.bf16 %v159_v42, %v155_v41  ;;  %v158_v50 = vld [vmem:[#allocation5 + $0x3b0] sm:$0xff]  ;;  %v161_v51 = vld [vmem:[#allocation5 + $0x3c8] sm:$0xff] }
  0x4f   :  { %369 = vmatpush1.bf16.msra.mxu0 %v368_v58  ;;  %v165_v52 = vld [vmem:[#allocation5 + $0x3e8] sm:$0xff]  ;;  %v163_v53 = vld [vmem:[#allocation5 + $0x3d8] sm:$0xff]  ;;  %v388_v55 = vpack.c.bf16 %v156_v47, %v152_v46  ;;  %v452_v56 = vpack.c.bf16 %v158_v50, %v154_v48  ;;  %v160_v58 = vld [vmem:[#allocation5 + $0x3c0] sm:$0xff] }
  0x50   :  { %433 = vmatpush1.bf16.msra.mxu1 %v432_v59  ;;  %371 = vmatprep.subr.bf16.mxu0 %v370_v60  ;;  %v167_v54 = vld [vmem:[#allocation5 + $0x3f8] sm:$0xff]  ;;  %v390_v57 = vpack.c.bf16 %v165_v52, %v161_v51  ;;  %v164_v59 = vld [vmem:[#allocation5 + $0x3e0] sm:$0xff]  ;;  %v162_v61 = vld [vmem:[#allocation5 + $0x3d0] sm:$0xff] }
  0x51   :  { %435 = vmatprep.subr.bf16.mxu1 %v434_v0  ;;  %v454_v60 = vpack.c.bf16 %v167_v54, %v163_v53  ;;  %v166_v62 = vld [vmem:[#allocation5 + $0x3f0] sm:$0xff]  ;;  %v392_v63 = vpack.c.bf16 %v164_v59, %v160_v58 }
  0x52   :  { %v456_v0 = vpack.c.bf16 %v166_v62, %v162_v61  ;;  %v38_v1 = vld [vmem:[#allocation2] sm:$0xff] }
  0x53   :  { %373 = vmatpush1.bf16.msra.mxu0 %v372_v6 }
  0x54   :  { %437 = vmatpush1.bf16.msra.mxu1 %v436_v8  ;;  %375 = vmatprep.subr.bf16.mxu0 %v374_v9 }
  0x55   :  { %439 = vmatprep.subr.bf16.mxu1 %v438_v13 }
  0x57   :  { %377 = vmatpush1.bf16.msra.mxu0 %v376_v19 }
  0x58   :  { %441 = vmatpush1.bf16.msra.mxu1 %v440_v20  ;;  %379 = vmatprep.subr.bf16.mxu0 %v378_v21 }
  0x59   :  { %443 = vmatprep.subr.bf16.mxu1 %v442_v25 }
  0x5b   :  { %381 = vmatpush1.bf16.msra.mxu0 %v380_v31 }
  0x5c   :  { %445 = vmatpush1.bf16.msra.mxu1 %v444_v32  ;;  %383 = vmatprep.subr.bf16.mxu0 %v382_v33 }
  0x5d   :  { %447 = vmatprep.subr.bf16.mxu1 %v446_v37 }
  0x5f   :  { %385 = vmatpush1.bf16.msra.mxu0 %v384_v43 }
  0x60   :  { %449 = vmatpush1.bf16.msra.mxu1 %v448_v44  ;;  %387 = vmatprep.subr.bf16.mxu0 %v386_v45 }
  0x61   :  { %451 = vmatprep.subr.bf16.mxu1 %v450_v49 }
  0x63   :  { %389 = vmatpush1.bf16.msra.mxu0 %v388_v55 }
  0x64   :  { %453 = vmatpush1.bf16.msra.mxu1 %v452_v56  ;;  %391 = vmatprep.subr.bf16.mxu0 %v390_v57 }
  0x65   :  { %455 = vmatprep.subr.bf16.mxu1 %v454_v60 }
  0x67   :  { %393 = vmatpush1.bf16.msra.mxu0 %v392_v63 }
  0x68   :  { %457 = vmatpush1.bf16.msra.mxu1 %v456_v0 }
  0x6a   :  { %233 = vmatmul.mubr.f32.vlgmr.msra.gmra.mrb[0].mxu0 %v38_v1 }
  0x6b   :  { %304 = vmatmul.mubr.f32.vlgmr.msra.gmra.mrb[0].mxu1 %v38_v1 }
 0x13d   :  { %v234_v2 = vpop.f32.mrb[0].mxu0 }
 0x13e   :  { %310 = vst [vmem:[#allocation7] sm:$0xff] %v234_v2  ;;  %v305_v3 = vpop.f32.mrb[0].mxu1  ;;  %v236_v4 = vpop.f32.mrb[1].mxu0 }
 0x13f   :  { %312 = vst [vmem:[#allocation7 + $0x10] sm:$0xff] %v305_v3  ;;  %311 = vst [vmem:[#allocation7 + $0x8] sm:$0xff] %v236_v4  ;;  %v307_v5 = vpop.f32.mrb[1].mxu1 }
 0x140   :  { %313 = vst [vmem:[#allocation7 + $0x18] sm:$0xff] %v307_v5 }
 0x141   :  { %518 = shalt.err (!%p515_p6)
}
 0x142   :  { %s519_s10 = scalar_lea.hbm %s600_s2, 512 }
 0x143   :  { %p520_p7 = scmp.ne.s32.totalorder %s600_s2, %s519_s10  ;;  %p523_p8 = scmp.lt.u32.totalorder %s519_s10, %s600_s2 }
 0x145   :  { %p525_p9 = pnand %p523_p8, %p520_p7 }
 0x147   :  { %528 = shalt.err (!%p525_p9)
}
 0x148   :  { %323 = dma.vmem_to_hbm [thread:$0]  %s321_s6, 512, %s600_s2, [#allocation4]  }
 0x149   :  { %533 = dma.done.wait [#allocation4], 512  }
 0x14a   :  { %534 = vsyncadd [#allocation4], 4294966784 }
 0x14b   :  { %327 = vsyncpa [#allocation3], 1 }
 0x14c   :  { %328 = vsyncpa [#allocation6], 1 }
 0x14d   :  { %329 = vsyncpa [#allocation4], 1 }

// kernel: tpu_custom_call.1
= control target key start
LH: loop header
LB: loop body
LE: loop exit
PB: predicated region body
PF: predicated region fallthrough
CT: control target
= control target key end

     0   :  { %7 = vsyncpa [#allocation3], 0  ;;  %s598_s0 = inlined_call_operand.hbm [shape: f32[8,256], index: 0, kind: input, shape index: {}]   ;;  %s599_s1 = inlined_call_operand.hbm [shape: f32[256,512], index: 1, kind: input, shape index: {}]   ;;  %s600_s2 = inlined_call_operand.hbm [shape: f32[8,512], index: 2, kind: output, shape index: {}]  }
   0x1   :  { %8 = vsyncpa [#allocation6], 0 }
   0x2   :  { %9 = vsyncpa [#allocation4], 0  ;;  %s535_s9 = smov [#allocation2]   ;;  %s536_s11 = smov [#allocation5]  }
   0x3   :  { %s16_s10 = sshll.u32 %s535_s9, 4  ;;  %s25_s12 = sshll.u32 %s536_s11, 4  ;;  %s17_s10 = int_to_ptr.vmem [resolvable:$true] %s16_s10  ;;  %s555_s12 = int_to_ptr.vmem [resolvable:$true] %s25_s12 }
   0x4   :  { %s463_s15 = scalar_lea.hbm %s598_s0, 256 }
   0x5   :  { %p464_p0 = scmp.ne.s32.totalorder %s598_s0, %s463_s15  ;;  %p467_p1 = scmp.lt.u32.totalorder %s463_s15, %s598_s0 }
   0x7   :  { %p469_p2 = pnand %p467_p1, %p464_p0 }
   0x9   :  { %472 = shalt.err (!%p469_p2)
}
   0xa   :  { %s473_s20 = scalar_lea.vmem %s17_s10, 256  ;;  %p478_p4 = scmp.lt.s32.totalorder %s17_s10, %s17_s10 }
   0xb   :  { %p474_p3 = scmp.ne.s32.totalorder %s17_s10, %s473_s20  ;;  %p479_p5 = scmp.lt.s32.totalorder %s473_s20, %s473_s20 }
   0xd   :  { %p480_p6 = por %p479_p5, %p478_p4 }
   0xf   :  { %p481_p7 = pnand %p480_p6, %p474_p3 }
  0x11   :  { %484 = shalt.err (!%p481_p7)
}
  0x12   :  { %19 = dma.hbm_to_vmem [thread:$0]  %s598_s0, 256, %s17_s10, [#allocation3]  }
  0x13   :  { %s485_s25 = scalar_lea.hbm %s599_s1, 16384 }
  0x14   :  { %p486_p8 = scmp.ne.s32.totalorder %s599_s1, %s485_s25  ;;  %p489_p9 = scmp.lt.u32.totalorder %s485_s25, %s599_s1 }
  0x16   :  { %p491_p10 = pnand %p489_p9, %p486_p8 }
  0x18   :  { %494 = shalt.err (!%p491_p10)
}
  0x19   :  { %s495_s30 = scalar_lea.vmem %s555_s12, 16384  ;;  %p500_p12 = scmp.lt.s32.totalorder %s555_s12, %s555_s12 }
  0x1a   :  { %p496_p11 = scmp.ne.s32.totalorder %s555_s12, %s495_s30  ;;  %p501_p13 = scmp.lt.s32.totalorder %s495_s30, %s495_s30 }
  0x1c   :  { %p502_p0 = por %p501_p13, %p500_p12 }
  0x1e   :  { %p503_p1 = pnand %p502_p0, %p496_p11 }
  0x20   :  { %506 = shalt.err (!%p503_p1)
}
  0x21   :  { %s537_s0 = smov 512   ;;  %s538_s3 = smov 32  }
  0x22   :  { %31 = dma.hbm_to_vmem [thread:$0]  %s599_s1, 16384, %s555_s12, [#allocation6], %s537_s0, %s537_s0, %s538_s3  }
  0x23   :  { %529 = dma.done.wait [#allocation3], 256  }
  0x24   :  { %530 = vsyncadd [#allocation3], 4294967040 }
  0x25   :  { %531 = dma.done.wait [#allocation6], 16384  }
  0x26   :  { %532 = vsyncadd [#allocation6], 4294950912  ;;  %v41_v0 = vld [vmem:[#allocation5 + $0x8] sm:$0xff]  ;;  %v43_v2 = vld [vmem:[#allocation5 + $0x18] sm:$0xff]  ;;  %s539_s1 = smov [#allocation7]  }
  0x27   :  { %v45_v1 = vld [vmem:[#allocation5 + $0x28] sm:$0xff]  ;;  %v47_v4 = vld [vmem:[#allocation5 + $0x38] sm:$0xff]  ;;  %v40_v5 = vld [vmem:[#allocation5] sm:$0xff]  ;;  %s320_s6 = sshll.u32 %s539_s1, 4  ;;  %s321_s6 = int_to_ptr.vmem [resolvable:$true] %s320_s6 }
  0x28   :  { %v330_v3 = vpack.c.bf16 %v45_v1, %v41_v0  ;;  %v44_v6 = vld [vmem:[#allocation5 + $0x20] sm:$0xff]  ;;  %v394_v7 = vpack.c.bf16 %v47_v4, %v43_v2  ;;  %v42_v9 = vld [vmem:[#allocation5 + $0x10] sm:$0xff]  ;;  %v49_v11 = vld [vmem:[#allocation5 + $0x48] sm:$0xff]  ;;  %s507_s7 = scalar_lea.vmem %s321_s6, 512  ;;  %p512_p3 = scmp.lt.s32.totalorder %s321_s6, %s321_s6 }
  0x29   :  { %v332_v8 = vpack.c.bf16 %v44_v6, %v40_v5  ;;  %v46_v10 = vld [vmem:[#allocation5 + $0x30] sm:$0xff]  ;;  %v53_v13 = vld [vmem:[#allocation5 + $0x68] sm:$0xff]  ;;  %v51_v14 = vld [vmem:[#allocation5 + $0x58] sm:$0xff]  ;;  %p508_p2 = scmp.ne.s32.totalorder %s321_s6, %s507_s7  ;;  %p513_p4 = scmp.lt.s32.totalorder %s507_s7, %s507_s7 }
  0x2a   :  { %331 = vmatprep.subr.bf16.mxu0 %v330_v3  ;;  %v396_v12 = vpack.c.bf16 %v46_v10, %v42_v9  ;;  %v55_v15 = vld [vmem:[#allocation5 + $0x78] sm:$0xff]  ;;  %395 = vmatprep.subr.bf16.mxu1 %v394_v7  ;;  %v334_v16 = vpack.c.bf16 %v53_v13, %v49_v11  ;;  %v48_v18 = vld [vmem:[#allocation5 + $0x40] sm:$0xff]  ;;  %v50_v20 = vld [vmem:[#allocation5 + $0x50] sm:$0xff] }
  0x2b   :  { %333 = vmatpush1.bf16.msra.mxu0 %v332_v8  ;;  %v398_v17 = vpack.c.bf16 %v55_v15, %v51_v14  ;;  %v52_v19 = vld [vmem:[#allocation5 + $0x60] sm:$0xff]  ;;  %v54_v22 = vld [vmem:[#allocation5 + $0x70] sm:$0xff]  ;;  %v57_v23 = vld [vmem:[#allocation5 + $0x88] sm:$0xff]  ;;  %p514_p5 = por %p513_p4, %p512_p3 }
  0x2c   :  { %397 = vmatpush1.bf16.msra.mxu1 %v396_v12  ;;  %v336_v21 = vpack.c.bf16 %v52_v19, %v48_v18  ;;  %v61_v24 = vld [vmem:[#allocation5 + $0xa8] sm:$0xff]  ;;  %335 = vmatprep.subr.bf16.mxu0 %v334_v16  ;;  %v400_v25 = vpack.c.bf16 %v54_v22, %v50_v20  ;;  %v59_v27 = vld [vmem:[#allocation5 + $0x98] sm:$0xff]  ;;  %v56_v29 = vld [vmem:[#allocation5 + $0x80] sm:$0xff] }
  0x2d   :  { %399 = vmatprep.subr.bf16.mxu1 %v398_v17  ;;  %v338_v26 = vpack.c.bf16 %v61_v24, %v57_v23  ;;  %v63_v28 = vld [vmem:[#allocation5 + $0xb8] sm:$0xff]  ;;  %v60_v31 = vld [vmem:[#allocation5 + $0xa0] sm:$0xff]  ;;  %v58_v32 = vld [vmem:[#allocation5 + $0x90] sm:$0xff]  ;;  %p515_p6 = pnand %p514_p5, %p508_p2 }
  0x2e   :  { %v402_v30 = vpack.c.bf16 %v63_v28, %v59_v27  ;;  %v62_v33 = vld [vmem:[#allocation5 + $0xb0] sm:$0xff]  ;;  %v340_v34 = vpack.c.bf16 %v60_v31, %v56_v29  ;;  %v65_v35 = vld [vmem:[#allocation5 + $0xc8] sm:$0xff]  ;;  %v67_v37 = vld [vmem:[#allocation5 + $0xd8] sm:$0xff] }
  0x2f   :  { %337 = vmatpush1.bf16.msra.mxu0 %v336_v21  ;;  %v69_v36 = vld [vmem:[#allocation5 + $0xe8] sm:$0xff]  ;;  %v404_v38 = vpack.c.bf16 %v62_v33, %v58_v32  ;;  %v71_v40 = vld [vmem:[#allocation5 + $0xf8] sm:$0xff]  ;;  %v64_v41 = vld [vmem:[#allocation5 + $0xc0] sm:$0xff] }
  0x30   :  { %401 = vmatpush1.bf16.msra.mxu1 %v400_v25  ;;  %339 = vmatprep.subr.bf16.mxu0 %v338_v26  ;;  %v342_v39 = vpack.c.bf16 %v69_v36, %v65_v35  ;;  %v68_v42 = vld [vmem:[#allocation5 + $0xe0] sm:$0xff]  ;;  %v406_v43 = vpack.c.bf16 %v71_v40, %v67_v37  ;;  %v66_v44 = vld [vmem:[#allocation5 + $0xd0] sm:$0xff]  ;;  %v73_v46 = vld [vmem:[#allocation5 + $0x108] sm:$0xff] }
  0x31   :  { %403 = vmatprep.subr.bf16.mxu1 %v402_v30  ;;  %v70_v45 = vld [vmem:[#allocation5 + $0xf0] sm:$0xff]  ;;  %v77_v47 = vld [vmem:[#allocation5 + $0x128] sm:$0xff]  ;;  %v75_v48 = vld [vmem:[#allocation5 + $0x118] sm:$0xff]  ;;  %v344_v50 = vpack.c.bf16 %v68_v42, %v64_v41 }
  0x32   :  { %v79_v49 = vld [vmem:[#allocation5 + $0x138] sm:$0xff]  ;;  %v408_v51 = vpack.c.bf16 %v70_v45, %v66_v44  ;;  %v346_v52 = vpack.c.bf16 %v77_v47, %v73_v46  ;;  %v72_v53 = vld [vmem:[#allocation5 + $0x100] sm:$0xff]  ;;  %v74_v55 = vld [vmem:[#allocation5 + $0x110] sm:$0xff] }
  0x33   :  { %341 = vmatpush1.bf16.msra.mxu0 %v340_v34  ;;  %v76_v54 = vld [vmem:[#allocation5 + $0x120] sm:$0xff]  ;;  %v410_v56 = vpack.c.bf16 %v79_v49, %v75_v48  ;;  %v78_v57 = vld [vmem:[#allocation5 + $0x130] sm:$0xff]  ;;  %v81_v58 = vld [vmem:[#allocation5 + $0x148] sm:$0xff] }
  0x34   :  { %405 = vmatpush1.bf16.msra.mxu1 %v404_v38  ;;  %343 = vmatprep.subr.bf16.mxu0 %v342_v39  ;;  %v85_v59 = vld [vmem:[#allocation5 + $0x168] sm:$0xff]  ;;  %v83_v60 = vld [vmem:[#allocation5 + $0x158] sm:$0xff]  ;;  %v348_v62 = vpack.c.bf16 %v76_v54, %v72_v53  ;;  %v412_v63 = vpack.c.bf16 %v78_v57, %v74_v55  ;;  %v80_v1 = vld [vmem:[#allocation5 + $0x140] sm:$0xff] }
  0x35   :  { %407 = vmatprep.subr.bf16.mxu1 %v406_v43  ;;  %v87_v61 = vld [vmem:[#allocation5 + $0x178] sm:$0xff]  ;;  %v350_v0 = vpack.c.bf16 %v85_v59, %v81_v58  ;;  %v84_v2 = vld [vmem:[#allocation5 + $0x160] sm:$0xff]  ;;  %v82_v3 = vld [vmem:[#allocation5 + $0x150] sm:$0xff] }
  0x36   :  { %v414_v4 = vpack.c.bf16 %v87_v61, %v83_v60  ;;  %v86_v5 = vld [vmem:[#allocation5 + $0x170] sm:$0xff]  ;;  %v89_v6 = vld [vmem:[#allocation5 + $0x188] sm:$0xff]  ;;  %v91_v8 = vld [vmem:[#allocation5 + $0x198] sm:$0xff]  ;;  %v352_v10 = vpack.c.bf16 %v84_v2, %v80_v1 }
  0x37   :  { %345 = vmatpush1.bf16.msra.mxu0 %v344_v50  ;;  %v93_v7 = vld [vmem:[#allocation5 + $0x1a8] sm:$0xff]  ;;  %v95_v9 = vld [vmem:[#allocation5 + $0x1b8] sm:$0xff]  ;;  %v416_v11 = vpack.c.bf16 %v86_v5, %v82_v3  ;;  %v88_v13 = vld [vmem:[#allocation5 + $0x180] sm:$0xff] }
  0x38   :  { %409 = vmatpush1.bf16.msra.mxu1 %v408_v51  ;;  %347 = vmatprep.subr.bf16.mxu0 %v346_v52  ;;  %v354_v12 = vpack.c.bf16 %v93_v7, %v89_v6  ;;  %v92_v14 = vld [vmem:[#allocation5 + $0x1a0] sm:$0xff]  ;;  %v90_v15 = vld [vmem:[#allocation5 + $0x190] sm:$0xff]  ;;  %v418_v16 = vpack.c.bf16 %v95_v9, %v91_v8  ;;  %v97_v18 = vld [vmem:[#allocation5 + $0x1c8] sm:$0xff] }
  0x39   :  { %411 = vmatprep.subr.bf16.mxu1 %v410_v56  ;;  %v94_v17 = vld [vmem:[#allocation5 + $0x1b0] sm:$0xff]  ;;  %v101_v19 = vld [vmem:[#allocation5 + $0x1e8] sm:$0xff]  ;;  %v99_v20 = vld [vmem:[#allocation5 + $0x1d8] sm:$0xff]  ;;  %v356_v22 = vpack.c.bf16 %v92_v14, %v88_v13 }
  0x3a   :  { %v103_v21 = vld [vmem:[#allocation5 + $0x1f8] sm:$0xff]  ;;  %v420_v23 = vpack.c.bf16 %v94_v17, %v90_v15  ;;  %v358_v24 = vpack.c.bf16 %v101_v19, %v97_v18  ;;  %v96_v25 = vld [vmem:[#allocation5 + $0x1c0] sm:$0xff]  ;;  %v98_v27 = vld [vmem:[#allocation5 + $0x1d0] sm:$0xff] }
  0x3b   :  { %349 = vmatpush1.bf16.msra.mxu0 %v348_v62  ;;  %v100_v26 = vld [vmem:[#allocation5 + $0x1e0] sm:$0xff]  ;;  %v422_v28 = vpack.c.bf16 %v103_v21, %v99_v20  ;;  %v102_v29 = vld [vmem:[#allocation5 + $0x1f0] sm:$0xff]  ;;  %v105_v30 = vld [vmem:[#allocation5 + $0x208] sm:$0xff] }
  0x3c   :  { %413 = vmatpush1.bf16.msra.mxu1 %v412_v63  ;;  %351 = vmatprep.subr.bf16.mxu0 %v350_v0  ;;  %v109_v31 = vld [vmem:[#allocation5 + $0x228] sm:$0xff]  ;;  %v107_v32 = vld [vmem:[#allocation5 + $0x218] sm:$0xff]  ;;  %v360_v34 = vpack.c.bf16 %v100_v26, %v96_v25  ;;  %v424_v35 = vpack.c.bf16 %v102_v29, %v98_v27  ;;  %v104_v37 = vld [vmem:[#allocation5 + $0x200] sm:$0xff] }
  0x3d   :  { %415 = vmatprep.subr.bf16.mxu1 %v414_v4  ;;  %v111_v33 = vld [vmem:[#allocation5 + $0x238] sm:$0xff]  ;;  %v362_v36 = vpack.c.bf16 %v109_v31, %v105_v30  ;;  %v108_v38 = vld [vmem:[#allocation5 + $0x220] sm:$0xff]  ;;  %v106_v39 = vld [vmem:[#allocation5 + $0x210] sm:$0xff] }
  0x3e   :  { %v426_v40 = vpack.c.bf16 %v111_v33, %v107_v32  ;;  %v110_v41 = vld [vmem:[#allocation5 + $0x230] sm:$0xff]  ;;  %v113_v42 = vld [vmem:[#allocation5 + $0x248] sm:$0xff]  ;;  %v115_v44 = vld [vmem:[#allocation5 + $0x258] sm:$0xff]  ;;  %v364_v46 = vpack.c.bf16 %v108_v38, %v104_v37 }
  0x3f   :  { %353 = vmatpush1.bf16.msra.mxu0 %v352_v10  ;;  %v117_v43 = vld [vmem:[#allocation5 + $0x268] sm:$0xff]  ;;  %v119_v45 = vld [vmem:[#allocation5 + $0x278] sm:$0xff]  ;;  %v428_v47 = vpack.c.bf16 %v110_v41, %v106_v39  ;;  %v112_v49 = vld [vmem:[#allocation5 + $0x240] sm:$0xff] }
  0x40   :  { %417 = vmatpush1.bf16.msra.mxu1 %v416_v11  ;;  %355 = vmatprep.subr.bf16.mxu0 %v354_v12  ;;  %v366_v48 = vpack.c.bf16 %v117_v43, %v113_v42  ;;  %v116_v50 = vld [vmem:[#allocation5 + $0x260] sm:$0xff]  ;;  %v114_v51 = vld [vmem:[#allocation5 + $0x250] sm:$0xff]  ;;  %v430_v52 = vpack.c.bf16 %v119_v45, %v115_v44  ;;  %v121_v54 = vld [vmem:[#allocation5 + $0x288] sm:$0xff] }
  0x41   :  { %419 = vmatprep.subr.bf16.mxu1 %v418_v16  ;;  %v118_v53 = vld [vmem:[#allocation5 + $0x270] sm:$0xff]  ;;  %v125_v55 = vld [vmem:[#allocation5 + $0x2a8] sm:$0xff]  ;;  %v123_v56 = vld [vmem:[#allocation5 + $0x298] sm:$0xff]  ;;  %v368_v58 = vpack.c.bf16 %v116_v50, %v112_v49 }
  0x42   :  { %v127_v57 = vld [vmem:[#allocation5 + $0x2b8] sm:$0xff]  ;;  %v432_v59 = vpack.c.bf16 %v118_v53, %v114_v51  ;;  %v370_v60 = vpack.c.bf16 %v125_v55, %v121_v54  ;;  %v120_v61 = vld [vmem:[#allocation5 + $0x280] sm:$0xff]  ;;  %v122_v63 = vld [vmem:[#allocation5 + $0x290] sm:$0xff] }
  0x43   :  { %357 = vmatpush1.bf16.msra.mxu0 %v356_v22  ;;  %v124_v62 = vld [vmem:[#allocation5 + $0x2a0] sm:$0xff]  ;;  %v434_v0 = vpack.c.bf16 %v127_v57, %v123_v56  ;;  %v126_v1 = vld [vmem:[#allocation5 + $0x2b0] sm:$0xff]  ;;  %v129_v2 = vld [vmem:[#allocation5 + $0x2c8] sm:$0xff] }
  0x44   :  { %421 = vmatpush1.bf16.msra.mxu1 %v420_v23  ;;  %359 = vmatprep.subr.bf16.mxu0 %v358_v24  ;;  %v133_v3 = vld [vmem:[#allocation5 + $0x2e8] sm:$0xff]  ;;  %v131_v4 = vld [vmem:[#allocation5 + $0x2d8] sm:$0xff]  ;;  %v372_v6 = vpack.c.bf16 %v124_v62, %v120_v61  ;;  %v128_v7 = vld [vmem:[#allocation5 + $0x2c0] sm:$0xff]  ;;  %v436_v8 = vpack.c.bf16 %v126_v1, %v122_v63 }
  0x45   :  { %423 = vmatprep.subr.bf16.mxu1 %v422_v28  ;;  %v135_v5 = vld [vmem:[#allocation5 + $0x2f8] sm:$0xff]  ;;  %v374_v9 = vpack.c.bf16 %v133_v3, %v129_v2  ;;  %v132_v10 = vld [vmem:[#allocation5 + $0x2e0] sm:$0xff]  ;;  %v130_v11 = vld [vmem:[#allocation5 + $0x2d0] sm:$0xff] }
  0x46   :  { %v134_v12 = vld [vmem:[#allocation5 + $0x2f0] sm:$0xff]  ;;  %v438_v13 = vpack.c.bf16 %v135_v5, %v131_v4  ;;  %v137_v14 = vld [vmem:[#allocation5 + $0x308] sm:$0xff]  ;;  %v39_v16 = vld [vmem:[#allocation2 + $0x8] sm:$0xff]  ;;  %v376_v19 = vpack.c.bf16 %v132_v10, %v128_v7 }
  0x47   :  { %361 = vmatpush1.bf16.msra.mxu0 %v360_v34  ;;  %v141_v15 = vld [vmem:[#allocation5 + $0x328] sm:$0xff]  ;;  %v139_v17 = vld [vmem:[#allocation5 + $0x318] sm:$0xff]  ;;  %232 = vmatprep.mubr.f32.mxu0 %v39_v16  ;;  %v440_v20 = vpack.c.bf16 %v134_v12, %v130_v11  ;;  %v136_v22 = vld [vmem:[#allocation5 + $0x300] sm:$0xff] }
  0x48   :  { %425 = vmatpush1.bf16.msra.mxu1 %v424_v35  ;;  %363 = vmatprep.subr.bf16.mxu0 %v362_v36  ;;  %v143_v18 = vld [vmem:[#allocation5 + $0x338] sm:$0xff]  ;;  %v378_v21 = vpack.c.bf16 %v141_v15, %v137_v14  ;;  %v140_v23 = vld [vmem:[#allocation5 + $0x320] sm:$0xff]  ;;  %v138_v24 = vld [vmem:[#allocation5 + $0x310] sm:$0xff] }
  0x49   :  { %427 = vmatprep.subr.bf16.mxu1 %v426_v40  ;;  %303 = vmatprep.mubr.f32.mxu1 %v39_v16  ;;  %v442_v25 = vpack.c.bf16 %v143_v18, %v139_v17  ;;  %v142_v26 = vld [vmem:[#allocation5 + $0x330] sm:$0xff]  ;;  %v145_v27 = vld [vmem:[#allocation5 + $0x348] sm:$0xff]  ;;  %v147_v29 = vld [vmem:[#allocation5 + $0x358] sm:$0xff]  ;;  %v380_v31 = vpack.c.bf16 %v140_v23, %v136_v22 }
  0x4a   :  { %v149_v28 = vld [vmem:[#allocation5 + $0x368] sm:$0xff]  ;;  %v151_v30 = vld [vmem:[#allocation5 + $0x378] sm:$0xff]  ;;  %v444_v32 = vpack.c.bf16 %v142_v26, %v138_v24  ;;  %v144_v34 = vld [vmem:[#allocation5 + $0x340] sm:$0xff] }
  0x4b   :  { %365 = vmatpush1.bf16.msra.mxu0 %v364_v46  ;;  %v382_v33 = vpack.c.bf16 %v149_v28, %v145_v27  ;;  %v148_v35 = vld [vmem:[#allocation5 + $0x360] sm:$0xff]  ;;  %v146_v36 = vld [vmem:[#allocation5 + $0x350] sm:$0xff]  ;;  %v446_v37 = vpack.c.bf16 %v151_v30, %v147_v29  ;;  %v153_v39 = vld [vmem:[#allocation5 + $0x388] sm:$0xff] }
  0x4c   :  { %429 = vmatpush1.bf16.msra.mxu1 %v428_v47  ;;  %367 = vmatprep.subr.bf16.mxu0 %v366_v48  ;;  %v150_v38 = vld [vmem:[#allocation5 + $0x370] sm:$0xff]  ;;  %v157_v40 = vld [vmem:[#allocation5 + $0x3a8] sm:$0xff]  ;;  %v155_v41 = vld [vmem:[#allocation5 + $0x398] sm:$0xff]  ;;  %v384_v43 = vpack.c.bf16 %v148_v35, %v144_v34 }
  0x4d   :  { %431 = vmatprep.subr.bf16.mxu1 %v430_v52  ;;  %v159_v42 = vld [vmem:[#allocation5 + $0x3b8] sm:$0xff]  ;;  %v448_v44 = vpack.c.bf16 %v150_v38, %v146_v36  ;;  %v386_v45 = vpack.c.bf16 %v157_v40, %v153_v39  ;;  %v152_v46 = vld [vmem:[#allocation5 + $0x380] sm:$0xff]  ;;  %v154_v48 = vld [vmem:[#allocation5 + $0x390] sm:$0xff] }
  0x4e   :  { %v156_v47 = vld [vmem:[#allocation5 + $0x3a0] sm:$0xff]  ;;  %v450_v49 = vpack.c.bf16 %v159_v42, %v155_v41  ;;  %v158_v50 = vld [vmem:[#allocation5 + $0x3b0] sm:$0xff]  ;;  %v161_v51 = vld [vmem:[#allocation5 + $0x3c8] sm:$0xff] }
  0x4f   :  { %369 = vmatpush1.bf16.msra.mxu0 %v368_v58  ;;  %v165_v52 = vld [vmem:[#allocation5 + $0x3e8] sm:$0xff]  ;;  %v163_v53 = vld [vmem:[#allocation5 + $0x3d8] sm:$0xff]  ;;  %v388_v55 = vpack.c.bf16 %v156_v47, %v152_v46  ;;  %v452_v56 = vpack.c.bf16 %v158_v50, %v154_v48  ;;  %v160_v58 = vld [vmem:[#allocation5 + $0x3c0] sm:$0xff] }
  0x50   :  { %433 = vmatpush1.bf16.msra.mxu1 %v432_v59  ;;  %371 = vmatprep.subr.bf16.mxu0 %v370_v60  ;;  %v167_v54 = vld [vmem:[#allocation5 + $0x3f8] sm:$0xff]  ;;  %v390_v57 = vpack.c.bf16 %v165_v52, %v161_v51  ;;  %v164_v59 = vld [vmem:[#allocation5 + $0x3e0] sm:$0xff]  ;;  %v162_v61 = vld [vmem:[#allocation5 + $0x3d0] sm:$0xff] }
  0x51   :  { %435 = vmatprep.subr.bf16.mxu1 %v434_v0  ;;  %v454_v60 = vpack.c.bf16 %v167_v54, %v163_v53  ;;  %v166_v62 = vld [vmem:[#allocation5 + $0x3f0] sm:$0xff]  ;;  %v392_v63 = vpack.c.bf16 %v164_v59, %v160_v58 }
  0x52   :  { %v456_v0 = vpack.c.bf16 %v166_v62, %v162_v61  ;;  %v38_v1 = vld [vmem:[#allocation2] sm:$0xff] }
  0x53   :  { %373 = vmatpush1.bf16.msra.mxu0 %v372_v6 }
  0x54   :  { %437 = vmatpush1.bf16.msra.mxu1 %v436_v8  ;;  %375 = vmatprep.subr.bf16.mxu0 %v374_v9 }
  0x55   :  { %439 = vmatprep.subr.bf16.mxu1 %v438_v13 }
  0x57   :  { %377 = vmatpush1.bf16.msra.mxu0 %v376_v19 }
  0x58   :  { %441 = vmatpush1.bf16.msra.mxu1 %v440_v20  ;;  %379 = vmatprep.subr.bf16.mxu0 %v378_v21 }
  0x59   :  { %443 = vmatprep.subr.bf16.mxu1 %v442_v25 }
  0x5b   :  { %381 = vmatpush1.bf16.msra.mxu0 %v380_v31 }
  0x5c   :  { %445 = vmatpush1.bf16.msra.mxu1 %v444_v32  ;;  %383 = vmatprep.subr.bf16.mxu0 %v382_v33 }
  0x5d   :  { %447 = vmatprep.subr.bf16.mxu1 %v446_v37 }
  0x5f   :  { %385 = vmatpush1.bf16.msra.mxu0 %v384_v43 }
  0x60   :  { %449 = vmatpush1.bf16.msra.mxu1 %v448_v44  ;;  %387 = vmatprep.subr.bf16.mxu0 %v386_v45 }
  0x61   :  { %451 = vmatprep.subr.bf16.mxu1 %v450_v49 }
  0x63   :  { %389 = vmatpush1.bf16.msra.mxu0 %v388_v55 }
  0x64   :  { %453 = vmatpush1.bf16.msra.mxu1 %v452_v56  ;;  %391 = vmatprep.subr.bf16.mxu0 %v390_v57 }
  0x65   :  { %455 = vmatprep.subr.bf16.mxu1 %v454_v60 }
  0x67   :  { %393 = vmatpush1.bf16.msra.mxu0 %v392_v63 }
  0x68   :  { %457 = vmatpush1.bf16.msra.mxu1 %v456_v0 }
  0x6a   :  { %233 = vmatmul.mubr.f32.vlgmr.msra.gmra.mrb[0].mxu0 %v38_v1 }
  0x6b   :  { %304 = vmatmul.mubr.f32.vlgmr.msra.gmra.mrb[0].mxu1 %v38_v1 }
 0x13d   :  { %v234_v2 = vpop.f32.mrb[0].mxu0 }
 0x13e   :  { %310 = vst [vmem:[#allocation7] sm:$0xff] %v234_v2  ;;  %v305_v3 = vpop.f32.mrb[0].mxu1  ;;  %v236_v4 = vpop.f32.mrb[1].mxu0 }
 0x13f   :  { %312 = vst [vmem:[#allocation7 + $0x10] sm:$0xff] %v305_v3  ;;  %311 = vst [vmem:[#allocation7 + $0x8] sm:$0xff] %v236_v4  ;;  %v307_v5 = vpop.f32.mrb[1].mxu1 }
 0x140   :  { %313 = vst [vmem:[#allocation7 + $0x18] sm:$0xff] %v307_v5 }
 0x141   :  { %518 = shalt.err (!%p515_p6)
}
 0x142   :  { %s519_s10 = scalar_lea.hbm %s600_s2, 512 }
 0x143   :  { %p520_p7 = scmp.ne.s32.totalorder %s600_s2, %s519_s10  ;;  %p523_p8 = scmp.lt.u32.totalorder %s519_s10, %s600_s2 }
 0x145   :  { %p525_p9 = pnand %p523_p8, %p520_p7 }
 0x147   :  { %528 = shalt.err (!%p525_p9)
}
 0x148   :  { %323 = dma.vmem_to_hbm [thread:$0]  %s321_s6, 512, %s600_s2, [#allocation4]  }
 0x149   :  { %533 = dma.done.wait [#allocation4], 512  }
 0x14a   :  { %534 = vsyncadd [#allocation4], 4294966784 }
 0x14b   :  { %327 = vsyncpa [#allocation3], 1 }
 0x14c   :  { %328 = vsyncpa [#allocation6], 1 }
 0x14d   :  { %329 = vsyncpa [#allocation4], 1 }

</bundles_post_ra>
